<compile_context>
chip_gen: v7x
topology: tpu7x:2x2x1
jax: 0.10.0
libtpu: 0.0.40
codegen_flags: <defaults>
</compile_context>

<pallas_src>
import jax
import jax.numpy as jnp
from jax.experimental import pallas as pl
from jax.experimental.pallas import tpu as pltpu


# ---------------------------------------------------------------------------
# Config (mirrors the missing `Config()` from the PyTorch source).
# ---------------------------------------------------------------------------
class Config:
    num_filters = 8
    n_gram = 3
    embed_size = 32


config = Config()


def _round_up(x, m):
    return ((x + m - 1) // m) * m


# ---------------------------------------------------------------------------
# Pallas kernel: implicit im2col -> G accumulated MXU dots + bias + ReLU.
#   x_ref: (B_blk, S_pad, E)    raw (padded) embeddings
#   w_ref: (G, E, F_pad)        pre-transposed, lane-padded weight
#   b_ref: (1, F_pad)           lane-padded bias
#   o_ref: (B_blk, L_pad, F_pad)
# ---------------------------------------------------------------------------
def _cnn_layer_kernel(x_ref, w_ref, b_ref, o_ref):
    b_blk, l_pad, f_pad = o_ref.shape
    g_taps = w_ref.shape[0]
    e = x_ref.shape[-1]

    acc = jnp.zeros((b_blk * l_pad, f_pad), jnp.float32)
    # Static unroll over the (small) n_gram taps: implicit im2col. The shifted
    # sublane slice + reshape is cheap XLU/addressing work in a mem-bound
    # kernel; it replaces a G-times duplicated HBM copy of x.
    for g in range(g_taps):
        xg = x_ref[:, g:g + l_pad, :].reshape(b_blk * l_pad, e)
        acc = acc + jnp.dot(xg, w_ref[g], preferred_element_type=jnp.float32)

    acc = jnp.maximum(acc + b_ref[...], 0.0)  # bias broadcast + ReLU
    # TODO(synk): nn.Dropout(p=0.5) is identity in eval mode; training-mode
    # stochastic masking (pltpu.prng_seed / prng_random_bits + 1/(1-p) scale)
    # intentionally not applied here.
    o_ref[...] = acc.reshape(b_blk, l_pad, f_pad).astype(o_ref.dtype)


# ---------------------------------------------------------------------------
# One-time parameter preparation (hoisted out of the per-call path).
#   weight: (F, G, E) -> (G, E, F_pad), bias: (F,) -> (1, F_pad)
# ---------------------------------------------------------------------------
def prepare_params(weight, bias):
    f_, g, e = weight.shape
    f_pad = _round_up(f_, 128)
    w_gef = jnp.transpose(weight, (1, 2, 0))                       # (G, E, F)
    w_pad = jnp.pad(w_gef, ((0, 0), (0, 0), (0, f_pad - f_)))      # (G, E, F_pad)
    b_pad = jnp.pad(bias, (0, f_pad - f_)).reshape(1, f_pad)       # (1, F_pad)
    return w_pad, b_pad


# ---------------------------------------------------------------------------
# Forward wrapper.
#   x: (B, S, E) f32, w_pad: (G, E, F_pad), b_pad: (1, F_pad)
#   -> (B, L, F) f32 with L = S - G + 1  (already in PyTorch's post-transpose
#      (B, L, F) layout).
# ---------------------------------------------------------------------------
def cnn_layer_forward(x, w_pad, b_pad, *, num_filters, n_gram):
    B, S, E = x.shape
    G = n_gram
    F_ = num_filters
    F_pad = w_pad.shape[-1]
    assert w_pad.shape == (G, E, F_pad)

    L = S - G + 1
    L_pad = _round_up(L, 8)                          # sublane-aligned output rows
    S_pad = _round_up(max(S, L_pad + G - 1), 8)      # room for the G-1 shifted reads

    # Size-gated TensorCore split (v7x has 2 TCs; v5e/v6e have 1). At small
    # B*L a multi-step grid is pure per-step overhead, so default to a single
    # kernel-body invocation.
    n_blocks = 2 if (B % 2 == 0 and B * L >= 4096) else 1
    B_blk = B // n_blocks

    # Keep per-block VMEM footprint well under the v7x scoped default.
    vmem_limit = 32 * 1024 * 1024
    block_bytes = 4 * (B_blk * S_pad * E + G * E * F_pad + F_pad
                       + B_blk * L_pad * F_pad)
    assert 2 * block_bytes < vmem_limit  # double-buffered blocks fit easily

    # Only per-call wrapper op: pad S up for aligned shifted reads.
    x_pad = jnp.pad(x, ((0, 0), (0, S_pad - S), (0, 0)))

    out_pad = pl.pallas_call(
        _cnn_layer_kernel,
        out_shape=jax.ShapeDtypeStruct((B, L_pad, F_pad), x.dtype),
        grid_spec=pltpu.PrefetchScalarGridSpec(
            num_scalar_prefetch=0,
            grid=(n_blocks,),
            in_specs=[
                pl.BlockSpec((B_blk, S_pad, E), lambda i: (i, 0, 0)),   # x
                pl.BlockSpec((G, E, F_pad), lambda i: (0, 0, 0)),       # weight
                pl.BlockSpec((1, F_pad), lambda i: (0, 0)),             # bias
            ],
            out_specs=pl.BlockSpec((B_blk, L_pad, F_pad), lambda i: (i, 0, 0)),
        ),
        compiler_params=pltpu.CompilerParams(
            dimension_semantics=("parallel",),
            vmem_limit_bytes=vmem_limit),
    )(x_pad, w_pad, b_pad)

    # Strip row/lane padding; layout already matches PyTorch's (B, L, F).
    return out_pad[:, :L, :F_]


# ---------------------------------------------------------------------------
# Pure-JAX reference (mirrors the PyTorch forward, dropout in eval mode).
# ---------------------------------------------------------------------------
def reference_forward(x, weight, bias):
    B, S, E = x.shape
    F_, G, _ = weight.shape
    L = S - G + 1
    windows = jnp.stack([x[:, g:g + L, :] for g in range(G)], axis=2)  # (B,L,G,E)
    windows = windows.reshape(B, L, G * E)
    w2 = weight.reshape(F_, G * E)
    out = jnp.einsum("blk,fk->blf", windows, w2) + bias[None, None, :]
    return jnp.maximum(out, 0.0)


if __name__ == "__main__":
    # Small shapes consistent with the module's forward.
    B, S, E = 2, 16, config.embed_size
    F_, G = config.num_filters, config.n_gram

    key = jax.random.PRNGKey(0)
    kx, kw, kb = jax.random.split(key, 3)
    x = jax.random.normal(kx, (B, S, E), dtype=jnp.float32)
    # Deterministic parameter init (Conv2d weight shape is (F, 1, G, E);
    # the in_channels=1 axis is squeezed away).
    fan_in = G * E
    bound = 1.0 / (fan_in ** 0.5)
    weight = jax.random.uniform(kw, (F_, G, E), jnp.float32, -bound, bound)
    bias = jax.random.uniform(kb, (F_,), jnp.float32, -bound, bound)

    # One-time parameter prep (padding/transpose hoisted out of forward).
    w_pad, b_pad = prepare_params(weight, bias)

    out = cnn_layer_forward(x, w_pad, b_pad, num_filters=F_, n_gram=G)
    out = jax.block_until_ready(out)

    ref = reference_forward(x, weight, bias)
    assert out.shape == (B, S - G + 1, F_), out.shape
    assert jnp.allclose(out, ref, atol=1e-4, rtol=1e-4), (
        float(jnp.max(jnp.abs(out - ref))))

    print("KERNEL_OK")
</pallas_src>

<mosaic_0001>
module attributes {stable_mosaic.version = 11 : i64} {
  func.func @_cnn_layer_kernel(%arg0: i32, %arg1: memref<2x24x32xf32, #tpu.memory_space<vmem>>, %arg2: memref<3x32x128xf32, #tpu.memory_space<vmem>>, %arg3: memref<1x128xf32, #tpu.memory_space<vmem>>, %arg4: memref<2x16x128xf32, #tpu.memory_space<vmem>>) attributes {dimension_semantics = [#tpu.dimension_semantics<parallel>], iteration_bounds = array<i64: 1>, scalar_prefetch = 0 : i64, scratch_operands = 0 : i64, tpu.core_type = #tpu.core_type<tc>, window_params = [{transform_indices = @transform_0, window_bounds = array<i64: 2, 24, 32>}, {pipeline_mode = #tpu.pipeline_mode<synchronous>, transform_indices = @transform_1, window_bounds = array<i64: 3, 32, 128>}, {pipeline_mode = #tpu.pipeline_mode<synchronous>, transform_indices = @transform_2, window_bounds = array<i64: 1, 128>}, {transform_indices = @transform_3, window_bounds = array<i64: 2, 16, 128>}]} {
    %cst = arith.constant 0.000000e+00 : f32
    %0 = vector.broadcast %cst : f32 to vector<32x128xf32>
    %c0 = arith.constant 0 : index
    %c0_0 = arith.constant 0 : index
    %c0_1 = arith.constant 0 : index
    %1 = vector.load %arg1[%c0, %c0_0, %c0_1] : memref<2x24x32xf32, #tpu.memory_space<vmem>>, vector<2x16x32xf32>
    %2 = vector.shape_cast %1 : vector<2x16x32xf32> to vector<32x32xf32>
    %c0_2 = arith.constant 0 : index
    %c0_3 = arith.constant 0 : index
    %c0_4 = arith.constant 0 : index
    %3 = vector.load %arg2[%c0_2, %c0_3, %c0_4] : memref<3x32x128xf32, #tpu.memory_space<vmem>>, vector<1x32x128xf32>
    %4 = vector.shape_cast %3 : vector<1x32x128xf32> to vector<32x128xf32>
    %cst_5 = arith.constant dense<0.000000e+00> : vector<32x128xf32>
    %5 = tpu.matmul %2, %4, %cst_5 {dimension_numbers = #tpu.dot_dimension_numbers<[1], [0], [0], [1], [0, 0, 1, 1], [], []>} : vector<32x32xf32>, vector<32x128xf32>, vector<32x128xf32> -> vector<32x128xf32>
    %6 = arith.addf %0, %5 : vector<32x128xf32>
    %c0_6 = arith.constant 0 : index
    %c1 = arith.constant 1 : index
    %c0_7 = arith.constant 0 : index
    %7 = vector.load %arg1[%c0_6, %c1, %c0_7] : memref<2x24x32xf32, #tpu.memory_space<vmem>>, vector<2x16x32xf32>
    %8 = vector.shape_cast %7 : vector<2x16x32xf32> to vector<32x32xf32>
    %c1_8 = arith.constant 1 : index
    %c0_9 = arith.constant 0 : index
    %c0_10 = arith.constant 0 : index
    %9 = vector.load %arg2[%c1_8, %c0_9, %c0_10] : memref<3x32x128xf32, #tpu.memory_space<vmem>>, vector<1x32x128xf32>
    %10 = vector.shape_cast %9 : vector<1x32x128xf32> to vector<32x128xf32>
    %cst_11 = arith.constant dense<0.000000e+00> : vector<32x128xf32>
    %11 = tpu.matmul %8, %10, %cst_11 {dimension_numbers = #tpu.dot_dimension_numbers<[1], [0], [0], [1], [0, 0, 1, 1], [], []>} : vector<32x32xf32>, vector<32x128xf32>, vector<32x128xf32> -> vector<32x128xf32>
    %12 = arith.addf %6, %11 : vector<32x128xf32>
    %c0_12 = arith.constant 0 : index
    %c2 = arith.constant 2 : index
    %c0_13 = arith.constant 0 : index
    %13 = vector.load %arg1[%c0_12, %c2, %c0_13] : memref<2x24x32xf32, #tpu.memory_space<vmem>>, vector<2x16x32xf32>
    %14 = vector.shape_cast %13 : vector<2x16x32xf32> to vector<32x32xf32>
    %c2_14 = arith.constant 2 : index
    %c0_15 = arith.constant 0 : index
    %c0_16 = arith.constant 0 : index
    %15 = vector.load %arg2[%c2_14, %c0_15, %c0_16] : memref<3x32x128xf32, #tpu.memory_space<vmem>>, vector<1x32x128xf32>
    %16 = vector.shape_cast %15 : vector<1x32x128xf32> to vector<32x128xf32>
    %cst_17 = arith.constant dense<0.000000e+00> : vector<32x128xf32>
    %17 = tpu.matmul %14, %16, %cst_17 {dimension_numbers = #tpu.dot_dimension_numbers<[1], [0], [0], [1], [0, 0, 1, 1], [], []>} : vector<32x32xf32>, vector<32x128xf32>, vector<32x128xf32> -> vector<32x128xf32>
    %18 = arith.addf %12, %17 : vector<32x128xf32>
    %c0_18 = arith.constant 0 : index
    %c0_19 = arith.constant 0 : index
    %19 = vector.load %arg3[%c0_18, %c0_19] : memref<1x128xf32, #tpu.memory_space<vmem>>, vector<1x128xf32>
    %20 = vector.broadcast %19 : vector<1x128xf32> to vector<32x128xf32>
    %21 = arith.addf %18, %20 : vector<32x128xf32>
    %cst_20 = arith.constant 0.000000e+00 : f32
    %22 = vector.broadcast %cst_20 : f32 to vector<32x128xf32>
    %23 = arith.maximumf %21, %22 : vector<32x128xf32>
    %24 = vector.shape_cast %23 : vector<32x128xf32> to vector<2x16x128xf32>
    %c0_21 = arith.constant 0 : index
    %c0_22 = arith.constant 0 : index
    %c0_23 = arith.constant 0 : index
    %25 = vector.load %arg4[%c0_21, %c0_22, %c0_23] : memref<2x16x128xf32, #tpu.memory_space<vmem>>, vector<2x16x128xf32>
    tpu.vector_store %arg4[%c0_21, %c0_22, %c0_23], %24 {strides = array<i32>} : memref<2x16x128xf32, #tpu.memory_space<vmem>>, vector<2x16x128xf32>,
    return
  }
  func.func @transform_0(%arg0: i32) -> (i32, i32, i32) {
    %c0_i32 = arith.constant 0 : i32
    %c0_i32_0 = arith.constant 0 : i32
    %c0_i32_1 = arith.constant 0 : i32
    return %arg0, %c0_i32, %c0_i32_0 : i32, i32, i32
  }
  func.func @transform_1(%arg0: i32) -> (i32, i32, i32) {
    %c0_i32 = arith.constant 0 : i32
    %c0_i32_0 = arith.constant 0 : i32
    %c0_i32_1 = arith.constant 0 : i32
    %c0_i32_2 = arith.constant 0 : i32
    return %c0_i32, %c0_i32_0, %c0_i32_1 : i32, i32, i32
  }
  func.func @transform_2(%arg0: i32) -> (i32, i32) {
    %c0_i32 = arith.constant 0 : i32
    %c0_i32_0 = arith.constant 0 : i32
    %c0_i32_1 = arith.constant 0 : i32
    return %c0_i32, %c0_i32_0 : i32, i32
  }
  func.func @transform_3(%arg0: i32) -> (i32, i32, i32) {
    %c0_i32 = arith.constant 0 : i32
    %c0_i32_0 = arith.constant 0 : i32
    %c0_i32_1 = arith.constant 0 : i32
    return %arg0, %c0_i32, %c0_i32_0 : i32, i32, i32
  }
}

</mosaic_0001>

<bundles_post_ra>
// kernel: tpu_custom_call.1
= control target key start
LH: loop header
LB: loop body
LE: loop exit
PB: predicated region body
PF: predicated region fallthrough
CT: control target
= control target key end

     0   :  { %8 = vsyncpa [#allocation3], 0  ;;  %s679_s0 = inlined_call_operand.hbm [shape: f32[2,24,32], index: 0, kind: input, shape index: {}]   ;;  %s680_s1 = inlined_call_operand.hbm [shape: f32[3,32,128], index: 1, kind: input, shape index: {}]   ;;  %s681_s2 = inlined_call_operand.vmem [shape: f32[1,128], index: 2, kind: input, shape index: {}]   ;;  %s682_s3 = inlined_call_operand.hbm [shape: f32[2,16,128], index: 3, kind: output, shape index: {}]  }
   0x1   :  { %9 = vsyncpa [#allocation6], 0 }
   0x2   :  { %10 = vsyncpa [#allocation4], 0  ;;  %s594_s12 = smov [#allocation2]   ;;  %s522_s16 = scalar_lea.hbm %s679_s0, 768 }
   0x3   :  { %s16_s13 = sshll.u32 %s594_s12, 4  ;;  %p523_p0 = scmp.ne.s32.totalorder %s679_s0, %s522_s16  ;;  %s17_s13 = int_to_ptr.vmem [resolvable:$true] %s16_s13 }
   0x4   :  { %p526_p1 = scmp.lt.u32.totalorder %s522_s16, %s679_s0 }
   0x6   :  { %p528_p2 = pnand %p526_p1, %p523_p0 }
   0x8   :  { %531 = shalt.err (!%p528_p2)
}
   0x9   :  { %s532_s21 = scalar_lea.vmem %s17_s13, 768  ;;  %p537_p4 = scmp.lt.s32.totalorder %s17_s13, %s17_s13 }
   0xa   :  { %p533_p3 = scmp.ne.s32.totalorder %s17_s13, %s532_s21  ;;  %p538_p5 = scmp.lt.s32.totalorder %s532_s21, %s532_s21 }
   0xc   :  { %p539_p6 = por %p538_p5, %p537_p4 }
   0xe   :  { %p540_p7 = pnand %p539_p6, %p533_p3 }
  0x10   :  { %543 = shalt.err (!%p540_p7)
}
  0x11   :  { %s595_s22 = smov 128   ;;  %s596_s23 = smov 8  }
  0x12   :  { %22 = dma.hbm_to_vmem [thread:$0]  %s679_s0, 768, %s17_s13, [#allocation3], %s595_s22, %s595_s22, %s596_s23  }
  0x13   :  { %s597_s26 = smov [#allocation5]   ;;  %s544_s30 = scalar_lea.hbm %s680_s1, 1536 }
  0x14   :  { %s28_s27 = sshll.u32 %s597_s26, 4  ;;  %p545_p8 = scmp.ne.s32.totalorder %s680_s1, %s544_s30  ;;  %s29_s27 = int_to_ptr.vmem [resolvable:$true] %s28_s27 }
  0x15   :  { %p548_p9 = scmp.lt.u32.totalorder %s544_s30, %s680_s1 }
  0x17   :  { %p550_p10 = pnand %p548_p9, %p545_p8 }
  0x19   :  { %553 = shalt.err (!%p550_p10)
}
  0x1a   :  { %s554_s8 = scalar_lea.vmem %s29_s27, 1536  ;;  %p559_p12 = scmp.lt.s32.totalorder %s29_s27, %s29_s27 }
  0x1b   :  { %p555_p11 = scmp.ne.s32.totalorder %s29_s27, %s554_s8  ;;  %p560_p13 = scmp.lt.s32.totalorder %s554_s8, %s554_s8 }
  0x1d   :  { %p561_p0 = por %p560_p13, %p559_p12 }
  0x1f   :  { %p562_p1 = pnand %p561_p0, %p555_p11 }
  0x21   :  { %565 = shalt.err (!%p562_p1)
}
  0x22   :  { %34 = dma.hbm_to_vmem [thread:$0]  %s680_s1, 1536, %s29_s27, [#allocation6], %s595_s22, %s595_s22, %s596_s23  }
  0x23   :  { %588 = dma.done.wait [#allocation3], 768  }
  0x24   :  { %589 = vsyncadd [#allocation3], 4294966528 }
  0x25   :  { %590 = dma.done.wait [#allocation6], 1536  }
  0x26   :  { %591 = vsyncadd [#allocation6], 4294965760  ;;  %v56_v0 = vld [vmem:[#allocation5 + $0x20] sm:$0xff]  ;;  %v57_v1 = vld [vmem:[#allocation5 + $0x28] sm:$0xff]  ;;  %vm60_vm0 = vcmask 261120   ;;  %s598_s11 = smov [#allocation7]  }
  0x27   :  { %v47_v2 = vld [vmem:[#allocation5] sm:$0xff]  ;;  %v481_v3 = vpack.c.bf16 %v57_v1, %v56_v0  ;;  %v48_v4 = vld [vmem:[#allocation5 + $0x8] sm:$0xff]  ;;  %v58_v5 = vld [vmem:[#allocation5 + $0x30] sm:$0xff]  ;;  %s389_s12 = sshll.u32 %s598_s11, 4  ;;  %s390_s12 = int_to_ptr.vmem [resolvable:$true] %s389_s12 }
  0x28   :  { %v59_v6 = vld [vmem:[#allocation5 + $0x38] sm:$0xff]  ;;  %v489_v7 = vpack.c.bf16 %v48_v4, %v47_v2  ;;  %v49_v9 = vld [vmem:[#allocation5 + $0x10] sm:$0xff]  ;;  %v260_v14 = vld [vmem:[#allocation5 + $0x40] sm:$0xff]  ;;  %p571_p3 = scmp.lt.s32.totalorder %s390_s12, %s390_s12 }
  0x29   :  { %v485_v8 = vpack.c.bf16 %v59_v6, %v58_v5  ;;  %v50_v10 = vld [vmem:[#allocation5 + $0x18] sm:$0xff]  ;;  %482 = vmatprep.subr.bf16.mxu1 %v481_v3  ;;  %v43_v13 = vld [vmem:[#allocation2] sm:$0xff]  ;;  %v261_v15 = vld [vmem:[#allocation5 + $0x48] sm:$0xff] }
  0x2a   :  { %v51_v11 = vld [vmem:[#allocation2 + $0x1] sm:$0xff]  ;;  %v493_v12 = vpack.c.bf16 %v50_v10, %v49_v9  ;;  %490 = vmatprep.subr.bf16.mxu0 %v489_v7  ;;  %484 = vmatpush3.bf16.msra.mxu1 %v481_v3  ;;  %v497_v16 = vpack.c.bf16 %v261_v15, %v260_v14  ;;  %v52_v19 = vld [vmem:[#allocation2 + $0x9] sm:$0xff]  ;;  %v53_v21 = vld [vmem:[#allocation2 + $0x19] sm:$0xff] }
  0x2b   :  { %447 = vmatprep.mubr.msk.f32.mxu1 %vm60_vm0, %v51_v11  ;;  %492 = vmatpush3.bf16.msra.mxu0 %v489_v7  ;;  %v262_v17 = vld [vmem:[#allocation5 + $0x50] sm:$0xff]  ;;  %v263_v18 = vld [vmem:[#allocation5 + $0x58] sm:$0xff]  ;;  %v45_v23 = vld [vmem:[#allocation2 + $0x18] sm:$0xff] }
  0x2c   :  { %486 = vmatprep.subr.bf16.mxu1 %v485_v8  ;;  %494 = vmatprep.subr.bf16.mxu0 %v493_v12  ;;  %v44_v20 = vld [vmem:[#allocation2 + $0x8] sm:$0xff]  ;;  %v501_v22 = vpack.c.bf16 %v263_v18, %v262_v17  ;;  %v46_v25 = vld [vmem:[#allocation2 + $0x20] sm:$0xff] }
  0x2d   :  { %461 = vmatprep.mubr.msk.f32.mxu0 %vm60_vm0, %v43_v13  ;;  %v54_v24 = vld [vmem:[#allocation2 + $0x21] sm:$0xff]  ;;  %v256_v29 = vld [vmem:[#allocation2 + $0xa] sm:$0xff]  ;;  %v414_v38 = vld [vmem:[%s681_s2] ss:$0 sm:$0xff]  ;;  %s566_s2 = scalar_lea.vmem %s390_s12, 512 }
  0x2e   :  { %488 = vmatpush3.bf16.msra.mxu1 %v485_v8  ;;  %v255_v26 = vld [vmem:[#allocation2 + $0x2] sm:$0xff]  ;;  %v257_v27 = vld [vmem:[#allocation2 + $0x1a] sm:$0xff]  ;;  %p567_p2 = scmp.ne.s32.totalorder %s390_s12, %s566_s2  ;;  %p572_p4 = scmp.lt.s32.totalorder %s566_s2, %s566_s2 }
  0x2f   :  { %496 = vmatpush3.bf16.msra.mxu0 %v493_v12  ;;  %505 = vmatprep.subr.bf16.mxu1 %v497_v16  ;;  %v258_v28 = vld [vmem:[#allocation2 + $0x22] sm:$0xff] }
  0x30   :  { %498 = vmatprep.subr.bf16.mxu0 %v497_v16  ;;  %p573_p5 = por %p572_p4, %p571_p3 }
  0x31   :  { %448 = vmatmul.mubr.msk.f32.vlgmr.msra.gmra.mrb[0].mxu1 %vm60_vm0, %v52_v19 }
  0x32   :  { %462 = vmatmul.mubr.msk.f32.vlgmr.msra.gmra.mrb[0].mxu0 %vm60_vm0, %v44_v20  ;;  %507 = vmatpush3.bf16.msra.mxu1 %v497_v16  ;;  %p574_p6 = pnand %p573_p5, %p567_p2 }
  0x33   :  { %500 = vmatpush3.bf16.msra.mxu0 %v497_v16  ;;  %450 = vmatprep.mubr.msk.f32.mxu1 %vm60_vm0, %v53_v21 }
  0x34   :  { %464 = vmatprep.mubr.msk.f32.mxu0 %vm60_vm0, %v45_v23  ;;  %502 = vmatprep.subr.bf16.mxu0 %v501_v22 }
  0x35   :  { %451 = vmatmul.mubr.msk.f32.gmra.mrb[2].mxu1 %vm60_vm0, %v54_v24  ;;  %506 = vmatprep.subr.bf16.mxu1 %v501_v22 }
  0x36   :  { %465 = vmatmul.mubr.msk.f32.gmra.mrb[2].mxu0 %vm60_vm0, %v46_v25  ;;  %508 = vmatpush3.bf16.msra.mxu1 %v501_v22 }
  0x37   :  { %504 = vmatpush3.bf16.msra.mxu0 %v501_v22  ;;  %475 = vmatprep.mubr.msk.f32.mxu0 %vm60_vm0, %v255_v26 }
  0x38   :  { %478 = vmatprep.mubr.msk.f32.mxu1 %vm60_vm0, %v257_v27 }
  0x39   :  { %479 = vmatmul.mubr.msk.f32.vlgmr.msra.gmra.mrb[4].mxu1 %vm60_vm0, %v258_v28 }
  0x3a   :  { %476 = vmatmul.mubr.msk.f32.vlgmr.msra.gmra.mrb[0].mxu0 %vm60_vm0, %v256_v29 }
 0x104   :  { %v449_v30 = vpop.f32.mrb[0].mxu1 }
 0x105   :  { %v139_v31 = vpop.f32.mrb[1].mxu1 }
 0x108   :  { %v452_v32 = vpop.f32.mrb[2].mxu1 }
 0x109   :  { %v466_v33 = vpop.f32.mrb[2].mxu0  ;;  %v149_v34 = vpop.f32.mrb[3].mxu1 }
 0x10a   :  { %v252_v35 = vadd.f32 %v466_v33, %v452_v32  ;;  %v246_v36 = vpop.f32.mrb[3].mxu0 }
 0x10b   :  { %v247_v37 = vadd.f32 %v246_v36, %v149_v34 }
 0x10c   :  { %v480_v39 = vpop.f32.mrb[4].mxu1 }
 0x10d   :  { %v477_v40 = vpop.f32.mrb[0].mxu0  ;;  %v364_v41 = vadd.f32 %v480_v39, %v252_v35  ;;  %v352_v42 = vpop.f32.mrb[5].mxu1 }
 0x10e   :  { %v509_v43 = vadd.f32 %v477_v40, %v449_v30  ;;  %v342_v44 = vpop.f32.mrb[1].mxu0  ;;  %v363_v45 = vadd.f32 %v352_v42, %v247_v37 }
 0x10f   :  { %v375_v46 = vadd.f32 %v414_v38, %v364_v41  ;;  %v510_v47 = vadd.f32 %v342_v44, %v139_v31 }
 0x110   :  { %v373_v48 = vadd.f32 %v509_v43, %v414_v38  ;;  %v374_v49 = vadd.f32 %v414_v38, %v363_v45 }
 0x111   :  { %v379_v50 = vmax.f32 %v375_v46, 0.0  ;;  %v372_v51 = vadd.f32 %v510_v47, %v414_v38 }
 0x112   :  { %v377_v52 = vmax.f32 %v373_v48, 0.0  ;;  %v378_v53 = vmax.f32 %v374_v49, 0.0 }
 0x113   :  { %383 = vst [vmem:[#allocation7 + $0x18] sm:$0xff] %v379_v50  ;;  %v376_v54 = vmax.f32 %v372_v51, 0.0 }
 0x114   :  { %381 = vst [vmem:[#allocation7 + $0x8] sm:$0xff] %v377_v52  ;;  %382 = vst [vmem:[#allocation7 + $0x10] sm:$0xff] %v378_v53 }
 0x115   :  { %380 = vst [vmem:[#allocation7] sm:$0xff] %v376_v54 }
 0x116   :  { %577 = shalt.err (!%p574_p6)
}
 0x117   :  { %s578_s15 = scalar_lea.hbm %s682_s3, 512 }
 0x118   :  { %p579_p7 = scmp.ne.s32.totalorder %s682_s3, %s578_s15  ;;  %p582_p8 = scmp.lt.u32.totalorder %s578_s15, %s682_s3 }
 0x11a   :  { %p584_p9 = pnand %p582_p8, %p579_p7 }
 0x11c   :  { %587 = shalt.err (!%p584_p9)
}
 0x11d   :  { %395 = dma.vmem_to_hbm [thread:$0]  %s390_s12, 512, %s682_s3, [#allocation4], %s595_s22, %s595_s22, %s596_s23  }
 0x11e   :  { %592 = dma.done.wait [#allocation4], 512  }
 0x11f   :  { %593 = vsyncadd [#allocation4], 4294966784 }
 0x120   :  { %399 = vsyncpa [#allocation3], 1 }
 0x121   :  { %400 = vsyncpa [#allocation6], 1 }
 0x122   :  { %401 = vsyncpa [#allocation4], 1 }

</bundles_post_ra>
